<compile_context>
chip_gen: v5e
topology: v5e:2x2
jax: 0.10.0
libtpu: 0.0.40
codegen_flags: <defaults>
</compile_context>

<pallas_src>
import math
import jax
import jax.numpy as jnp
from jax.experimental import pallas as pl
from jax.experimental.pallas import tpu as pltpu

# ---- module hyper-parameters (config) ----
D = 32            # config.num_dims
H = 4             # attention heads
HD = D // H       # head dim
HIDDEN = 4 * D    # PraxisMLP hidden size
EPS = 1e-6        # config.epsilon
NEG = -1e9


# --------------------------- fused block kernel ------------------------------
def _praxis_block_kernel(x_ref, addm_ref, r_ref, bias_ref,
                         anw_ref, wqkv_ref, bqkv_ref, wo_ref, bo_ref,
                         mnw_ref, wup_ref, bup_ref, wdn_ref, bdn_ref,
                         o_ref):
    cdt = wqkv_ref.dtype                     # matmul operand dtype (f32 / bf16)
    x = x_ref[...].astype(jnp.float32)       # (M, D), M = BB * T (batch folded)
    M = x.shape[0]

    # ---------------- attention sub-block ----------------
    # attn_norm (RMSNorm) fused as matmul prologue
    anw = anw_ref[...].astype(jnp.float32)                    # (1, D)
    xn = x * jax.lax.rsqrt(jnp.mean(x * x, axis=-1, keepdims=True) + EPS) * anw

    # fused Q/K/V projection: one (M, D) @ (D, 3D) matmul
    qkv = jnp.dot(xn.astype(cdt), wqkv_ref[...],
                  preferred_element_type=jnp.float32)
    qkv = qkv + bqkv_ref[...].astype(jnp.float32)             # (M, 3D)

    # mask math hoisted out of the head loop:
    #   bias_ref: (M, M) batch-block-diagonal causal bias (host precomputed)
    #   addm_ref: (1, M) additive key-padding mask ((mask-1)*1e9)
    bias = bias_ref[...] + addm_ref[...]                       # (M, M)

    scale = 1.0 / math.sqrt(HD)
    wo = wo_ref[...]                                           # (D, D) [in,out]

    # Per-head attention; the head concat is folded into the O projection:
    #     attn = sum_h (P_h @ V_h) @ Wo[h*HD:(h+1)*HD, :]
    # TODO(synk): for long sequences switch to a KV-tiled (flash-style) inner
    #             loop so the (M, M) score tile cannot blow v7x's 64 MiB VMEM.
    attn = jnp.zeros((M, D), jnp.float32)
    for h in range(H):
        qh = qkv[:, h * HD:(h + 1) * HD].astype(cdt)
        kh = qkv[:, D + h * HD:D + (h + 1) * HD].astype(cdt)
        vh = qkv[:, 2 * D + h * HD:2 * D + (h + 1) * HD].astype(cdt)
        s = jax.lax.dot_general(qh, kh, (((1,), (1,)), ((), ())),
                                preferred_element_type=jnp.float32)
        s = s * scale + bias
        s = s - jnp.max(s, axis=-1, keepdims=True)
        p = jnp.exp(s)
        p = p * pl.reciprocal(jnp.sum(p, axis=-1, keepdims=True), approx=True)
        hout = jnp.dot(p.astype(cdt), vh, preferred_element_type=jnp.float32)
        attn = attn + jnp.dot(hout.astype(cdt), wo[h * HD:(h + 1) * HD, :],
                              preferred_element_type=jnp.float32)

    # output-projection bias + residual epilogue (dropout = identity)
    hidden = attn + bo_ref[...].astype(jnp.float32) + x        # (M, D)

    # ---------------- MLP expert sub-block ----------------
    mnw = mnw_ref[...].astype(jnp.float32)
    hn = hidden * jax.lax.rsqrt(
        jnp.mean(hidden * hidden, axis=-1, keepdims=True) + EPS) * mnw
    up = jnp.dot(hn.astype(cdt), wup_ref[...],
                 preferred_element_type=jnp.float32)
    up = jax.nn.gelu(up + bup_ref[...].astype(jnp.float32), approximate=True)
    down = jnp.dot(up.astype(cdt), wdn_ref[...],
                   preferred_element_type=jnp.float32)
    down = down + bdn_ref[...].astype(jnp.float32)

    # router scaling + residual epilogue (dropout = identity)
    r = r_ref[...].astype(jnp.float32)                          # (M, 1)
    o_ref[...] = (down * r + hidden).astype(o_ref.dtype)


# ------------------------------ forward wrapper -------------------------------
def prepare_weights(params, matmul_dtype=None):
    """Pre-transpose / fuse weights once: [out,in] (PyTorch) -> [in,out].

    If matmul_dtype is given (e.g. jnp.bfloat16 on v6e/v7x), the large matmul
    weights are stored in that dtype; biases/norm weights stay f32.
    """
    wd = matmul_dtype if matmul_dtype is not None else jnp.float32
    return {
        "anorm": params["attn_norm_w"].reshape(1, D).astype(jnp.float32),
        "mnorm": params["mlp_norm_w"].reshape(1, D).astype(jnp.float32),
        "wqkv_t": jnp.concatenate(
            [params["wq"], params["wk"], params["wv"]], axis=0).T.astype(wd),
        "bqkv": jnp.concatenate(
            [params["bq"], params["bk"], params["bv"]]).reshape(1, 3 * D)
            .astype(jnp.float32),
        "wo_t": params["wo"].T.astype(wd),                          # (D, D)
        "bo": params["bo"].reshape(1, D).astype(jnp.float32),
        "wup_t": params["up_w"].T.astype(wd),                       # (D, HIDDEN)
        "bup": params["up_b"].reshape(1, HIDDEN).astype(jnp.float32),
        "wdn_t": params["down_w"].T.astype(wd),                     # (HIDDEN, D)
        "bdn": params["down_b"].reshape(1, D).astype(jnp.float32),
    }


def praxis_block_forward(prepped, inputs, attention_mask, router_weights=None,
                         batch_block=None):
    B, T, Dm = inputs.shape

    # Fold as many batch rows as possible into one grid step (M = BB*T fills
    # the MXU / vreg sublanes), capped so the (M, M) score tile stays small.
    if batch_block is None:
        batch_block = B
        while batch_block * T > 512 and batch_block % 2 == 0:
            batch_block //= 2
    BB = batch_block
    assert B % BB == 0, "batch must be divisible by the batch block"
    C = B // BB
    M = BB * T

    x = inputs.reshape(C, M, Dm)
    addm = ((attention_mask.astype(jnp.float32) - 1.0) * 1e9).reshape(C, 1, M)
    if router_weights is None:
        router = jnp.ones((C, M, 1), inputs.dtype)
    else:
        router = router_weights.reshape(C, M, 1).astype(inputs.dtype)

    # Batch-block-diagonal causal bias, identical for every grid step
    # (cross-batch entries get a strictly more negative bias so they vanish
    # even for fully padding-masked rows).
    ids = jnp.arange(M, dtype=jnp.int32)
    same_batch = (ids[:, None] // T) == (ids[None, :] // T)
    causal = (ids[None, :] % T) <= (ids[:, None] % T)
    base_bias = jnp.where(same_batch,
                          jnp.where(causal, 0.0, NEG),
                          3.0 * NEG).astype(jnp.float32)

    def const(shape):
        # weight blocks: index map constant in the grid axis -> stays in VMEM
        return pl.BlockSpec(shape, lambda c: (0, 0))

    # advisory cost estimate for the XLA scheduler
    flops_per_chunk = (
        2 * M * Dm * 3 * Dm                 # fused QKV proj
        + H * 2 * (2 * M * M * HD)          # scores + P@V
        + H * 2 * M * HD * Dm               # folded O proj
        + 2 * M * Dm * HIDDEN               # MLP up
        + 2 * M * HIDDEN * Dm)              # MLP down
    trans_per_chunk = H * M * M + M * HIDDEN + 4 * M
    weight_bytes = sum(int(v.size) * int(v.dtype.itemsize)
                       for v in prepped.values())
    cost = pl.CostEstimate(
        flops=int(C * flops_per_chunk),
        transcendentals=int(C * trans_per_chunk),
        bytes_accessed=int(2 * inputs.size * inputs.dtype.itemsize
                           + weight_bytes
                           + addm.size * 4 + router.size * router.dtype.itemsize
                           + base_bias.size * 4))

    out = pl.pallas_call(
        _praxis_block_kernel,
        out_shape=jax.ShapeDtypeStruct((C, M, Dm), inputs.dtype),
        grid=(C,),
        in_specs=[
            pl.BlockSpec((None, M, Dm), lambda c: (c, 0, 0)),   # x (batch folded)
            pl.BlockSpec((None, 1, M), lambda c: (c, 0, 0)),    # additive key mask
            pl.BlockSpec((None, M, 1), lambda c: (c, 0, 0)),    # router weights
            const((M, M)),                                      # causal/batch bias
            const((1, Dm)),                                     # attn_norm w
            const((Dm, 3 * Dm)), const((1, 3 * Dm)),            # fused QKV
            const((Dm, Dm)), const((1, Dm)),                    # O proj
            const((1, Dm)),                                     # mlp_norm w
            const((Dm, HIDDEN)), const((1, HIDDEN)),            # MLP up
            const((HIDDEN, Dm)), const((1, Dm)),                # MLP down
        ],
        out_specs=pl.BlockSpec((None, M, Dm), lambda c: (c, 0, 0)),
        compiler_params=pltpu.CompilerParams(
            dimension_semantics=("parallel",)),
        cost_estimate=cost,
    )(x, addm, router, base_bias,
      prepped["anorm"], prepped["wqkv_t"], prepped["bqkv"],
      prepped["wo_t"], prepped["bo"],
      prepped["mnorm"], prepped["wup_t"], prepped["bup"],
      prepped["wdn_t"], prepped["bdn"])
    return out.reshape(B, T, Dm)


# --------------------------- pure-JAX reference --------------------------------
def reference_forward(params, inputs, attention_mask, router_weights=None):
    hi = jax.lax.Precision.HIGHEST
    x = inputs.astype(jnp.float32)
    B, T, _ = x.shape

    def rms(h, w):
        return h * jax.lax.rsqrt(jnp.mean(h * h, -1, keepdims=True) + EPS) * w

    def lin(h, w, b):
        return jnp.einsum('btd,nd->btn', h, w, precision=hi) + b

    n = rms(x, params["attn_norm_w"])
    q = lin(n, params["wq"], params["bq"]).reshape(B, T, H, HD)
    k = lin(n, params["wk"], params["bk"]).reshape(B, T, H, HD)
    v = lin(n, params["wv"], params["bv"]).reshape(B, T, H, HD)
    s = jnp.einsum('bqhd,bkhd->bhqk', q, k, precision=hi) / math.sqrt(HD)
    causal = jnp.tril(jnp.ones((T, T), bool))
    s = jnp.where(causal[None, None], s, NEG)
    s = s + ((attention_mask.astype(jnp.float32) - 1.0) * 1e9)[:, None, None, :]
    p = jax.nn.softmax(s, axis=-1)
    a = jnp.einsum('bhqk,bkhd->bqhd', p, v, precision=hi).reshape(B, T, D)
    a = lin(a, params["wo"], params["bo"])
    h1 = a + x
    n2 = rms(h1, params["mlp_norm_w"])
    up = jax.nn.gelu(lin(n2, params["up_w"], params["up_b"]), approximate=True)
    dn = lin(up, params["down_w"], params["down_b"])
    if router_weights is not None:
        dn = dn * router_weights
    return dn + h1


# --------------------------- deterministic params ------------------------------
def init_params(key):
    ks = jax.random.split(key, 12)

    def lin(kw, kb, n_out, n_in):
        scale = 1.0 / math.sqrt(n_in)
        w = jax.random.uniform(kw, (n_out, n_in), jnp.float32, -scale, scale)
        b = jax.random.uniform(kb, (n_out,), jnp.float32, -scale, scale)
        return w, b

    wq, bq = lin(ks[0], ks[1], D, D)
    wk, bk = lin(ks[2], ks[3], D, D)
    wv, bv = lin(ks[4], ks[5], D, D)
    wo, bo = lin(ks[6], ks[7], D, D)
    up_w, up_b = lin(ks[8], ks[9], HIDDEN, D)
    down_w, down_b = lin(ks[10], ks[11], D, HIDDEN)
    return {
        "attn_norm_w": jnp.ones((D,), jnp.float32),
        "mlp_norm_w": jnp.ones((D,), jnp.float32),
        "wq": wq, "bq": bq, "wk": wk, "bk": bk,
        "wv": wv, "bv": bv, "wo": wo, "bo": bo,
        "up_w": up_w, "up_b": up_b, "down_w": down_w, "down_b": down_b,
    }


if __name__ == "__main__":
    key = jax.random.PRNGKey(0)
    kp, kx, kr = jax.random.split(key, 3)

    B, T = 2, 8
    params = init_params(kp)

    inputs = jax.random.normal(kx, (B, T, D), jnp.float32)
    attention_mask = jnp.ones((B, T), jnp.float32)                   # no padding
    router_weights = jax.random.uniform(kr, (B, T, 1), jnp.float32)  # optional

    ref = reference_forward(params, inputs, attention_mask, router_weights)

    # f32 path (tight check vs reference)
    prepped = prepare_weights(params)
    out = praxis_block_forward(prepped, inputs, attention_mask, router_weights)
    out = jax.block_until_ready(out)
    assert out.shape == (B, T, D) and out.dtype == jnp.float32
    assert bool(jnp.all(jnp.isfinite(out)))
    max_err = float(jnp.max(jnp.abs(out - ref)))
    assert max_err < 5e-2, f"mismatch vs reference: max abs err {max_err}"

    # bf16 matmul path (recommended on v6e/v7x): loose check vs f32 reference
    prepped_bf16 = prepare_weights(params, jnp.bfloat16)
    out_bf16 = praxis_block_forward(prepped_bf16, inputs, attention_mask,
                                    router_weights)
    out_bf16 = jax.block_until_ready(out_bf16)
    assert bool(jnp.all(jnp.isfinite(out_bf16)))
    bf16_err = float(jnp.max(jnp.abs(out_bf16 - ref)))
    assert bf16_err < 5e-1, f"bf16 path far from reference: {bf16_err}"

    print("KERNEL_OK")
</pallas_src>

<mosaic_0001>
module attributes {stable_mosaic.version = 11 : i64} {
  func.func @_praxis_block_kernel(%arg0: i32, %arg1: memref<1x16x32xf32, #tpu.memory_space<vmem>>, %arg2: memref<1x1x16xf32, #tpu.memory_space<vmem>>, %arg3: memref<1x16x1xf32, #tpu.memory_space<vmem>>, %arg4: memref<16x16xf32, #tpu.memory_space<vmem>>, %arg5: memref<1x32xf32, #tpu.memory_space<vmem>>, %arg6: memref<32x96xf32, #tpu.memory_space<vmem>>, %arg7: memref<1x96xf32, #tpu.memory_space<vmem>>, %arg8: memref<32x32xf32, #tpu.memory_space<vmem>>, %arg9: memref<1x32xf32, #tpu.memory_space<vmem>>, %arg10: memref<1x32xf32, #tpu.memory_space<vmem>>, %arg11: memref<32x128xf32, #tpu.memory_space<vmem>>, %arg12: memref<1x128xf32, #tpu.memory_space<vmem>>, %arg13: memref<128x32xf32, #tpu.memory_space<vmem>>, %arg14: memref<1x32xf32, #tpu.memory_space<vmem>>, %arg15: memref<1x16x32xf32, #tpu.memory_space<vmem>>) attributes {dimension_semantics = [#tpu.dimension_semantics<parallel>], iteration_bounds = array<i64: 1>, scalar_prefetch = 0 : i64, scratch_operands = 0 : i64, tpu.core_type = #tpu.core_type<tc>, window_params = [{transform_indices = @transform_0, window_bounds = array<i64: 1, 16, 32>}, {transform_indices = @transform_1, window_bounds = array<i64: 1, 1, 16>}, {transform_indices = @transform_2, window_bounds = array<i64: 1, 16, 1>}, {pipeline_mode = #tpu.pipeline_mode<synchronous>, transform_indices = @transform_3, window_bounds = array<i64: 16, 16>}, {pipeline_mode = #tpu.pipeline_mode<synchronous>, transform_indices = @transform_4, window_bounds = array<i64: 1, 32>}, {pipeline_mode = #tpu.pipeline_mode<synchronous>, transform_indices = @transform_5, window_bounds = array<i64: 32, 96>}, {pipeline_mode = #tpu.pipeline_mode<synchronous>, transform_indices = @transform_6, window_bounds = array<i64: 1, 96>}, {pipeline_mode = #tpu.pipeline_mode<synchronous>, transform_indices = @transform_7, window_bounds = array<i64: 32, 32>}, {pipeline_mode = #tpu.pipeline_mode<synchronous>, transform_indices = @transform_8, window_bounds = array<i64: 1, 32>}, {pipeline_mode = #tpu.pipeline_mode<synchronous>, transform_indices = @transform_9, window_bounds = array<i64: 1, 32>}, {pipeline_mode = #tpu.pipeline_mode<synchronous>, transform_indices = @transform_10, window_bounds = array<i64: 32, 128>}, {pipeline_mode = #tpu.pipeline_mode<synchronous>, transform_indices = @transform_11, window_bounds = array<i64: 1, 128>}, {pipeline_mode = #tpu.pipeline_mode<synchronous>, transform_indices = @transform_12, window_bounds = array<i64: 128, 32>}, {pipeline_mode = #tpu.pipeline_mode<synchronous>, transform_indices = @transform_13, window_bounds = array<i64: 1, 32>}, {transform_indices = @transform_14, window_bounds = array<i64: 1, 16, 32>}]} {
    %c0 = arith.constant 0 : index
    %c0_0 = arith.constant 0 : index
    %c0_1 = arith.constant 0 : index
    %0 = vector.load %arg1[%c0, %c0_0, %c0_1] : memref<1x16x32xf32, #tpu.memory_space<vmem>>, vector<1x16x32xf32>
    %1 = vector.shape_cast %0 : vector<1x16x32xf32> to vector<16x32xf32>
    %c0_2 = arith.constant 0 : index
    %c0_3 = arith.constant 0 : index
    %2 = vector.load %arg5[%c0_2, %c0_3] : memref<1x32xf32, #tpu.memory_space<vmem>>, vector<1x32xf32>
    %3 = arith.mulf %1, %1 : vector<16x32xf32>
    %cst = arith.constant dense<0.000000e+00> : vector<16xf32>
    %4 = vector.multi_reduction <add>, %3, %cst [1] : vector<16x32xf32> to vector<16xf32>
    %5 = vector.shape_cast %4 : vector<16xf32> to vector<16x1xf32>
    %cst_4 = arith.constant 3.200000e+01 : f32
    %6 = vector.broadcast %cst_4 : f32 to vector<16x1xf32>
    %7 = arith.divf %5, %6 : vector<16x1xf32>
    %cst_5 = arith.constant 9.99999997E-7 : f32
    %8 = vector.broadcast %cst_5 : f32 to vector<16x1xf32>
    %9 = arith.addf %7, %8 : vector<16x1xf32>
    %10 = math.rsqrt %9 : vector<16x1xf32>
    %11 = vector.broadcast %10 : vector<16x1xf32> to vector<16x32xf32>
    %12 = arith.mulf %1, %11 : vector<16x32xf32>
    %13 = vector.broadcast %2 : vector<1x32xf32> to vector<16x32xf32>
    %14 = arith.mulf %12, %13 : vector<16x32xf32>
    %c0_6 = arith.constant 0 : index
    %c0_7 = arith.constant 0 : index
    %15 = vector.load %arg6[%c0_6, %c0_7] : memref<32x96xf32, #tpu.memory_space<vmem>>, vector<32x96xf32>
    %cst_8 = arith.constant dense<0.000000e+00> : vector<16x96xf32>
    %16 = tpu.matmul %14, %15, %cst_8 {dimension_numbers = #tpu.dot_dimension_numbers<[1], [0], [0], [1], [0, 0, 1, 1], [], []>} : vector<16x32xf32>, vector<32x96xf32>, vector<16x96xf32> -> vector<16x96xf32>
    %c0_9 = arith.constant 0 : index
    %c0_10 = arith.constant 0 : index
    %17 = vector.load %arg7[%c0_9, %c0_10] : memref<1x96xf32, #tpu.memory_space<vmem>>, vector<1x96xf32>
    %18 = vector.broadcast %17 : vector<1x96xf32> to vector<16x96xf32>
    %19 = arith.addf %16, %18 : vector<16x96xf32>
    %c0_11 = arith.constant 0 : index
    %c0_12 = arith.constant 0 : index
    %20 = vector.load %arg4[%c0_11, %c0_12] : memref<16x16xf32, #tpu.memory_space<vmem>>, vector<16x16xf32>
    %c0_13 = arith.constant 0 : index
    %c0_14 = arith.constant 0 : index
    %c0_15 = arith.constant 0 : index
    %21 = vector.load %arg2[%c0_13, %c0_14, %c0_15] : memref<1x1x16xf32, #tpu.memory_space<vmem>>, vector<1x1x16xf32>
    %22 = vector.shape_cast %21 : vector<1x1x16xf32> to vector<1x16xf32>
    %23 = vector.broadcast %22 : vector<1x16xf32> to vector<16x16xf32>
    %24 = arith.addf %20, %23 : vector<16x16xf32>
    %c0_16 = arith.constant 0 : index
    %c0_17 = arith.constant 0 : index
    %25 = vector.load %arg8[%c0_16, %c0_17] : memref<32x32xf32, #tpu.memory_space<vmem>>, vector<32x32xf32>
    %cst_18 = arith.constant 0.000000e+00 : f32
    %26 = vector.broadcast %cst_18 : f32 to vector<16x32xf32>
    %27 = vector.extract_strided_slice %19 {offsets = [0, 0], sizes = [16, 8], strides = [1, 1]} : vector<16x96xf32> to vector<16x8xf32>
    %28 = vector.extract_strided_slice %19 {offsets = [0, 32], sizes = [16, 8], strides = [1, 1]} : vector<16x96xf32> to vector<16x8xf32>
    %29 = vector.extract_strided_slice %19 {offsets = [0, 64], sizes = [16, 8], strides = [1, 1]} : vector<16x96xf32> to vector<16x8xf32>
    %cst_19 = arith.constant dense<0.000000e+00> : vector<16x16xf32>
    %30 = tpu.matmul %27, %28, %cst_19 {dimension_numbers = #tpu.dot_dimension_numbers<[1], [1], [0], [0], [0, 0, 1, 0], [], []>} : vector<16x8xf32>, vector<16x8xf32>, vector<16x16xf32> -> vector<16x16xf32>
    %cst_20 = arith.constant 0.353553385 : f32
    %31 = vector.broadcast %cst_20 : f32 to vector<16x16xf32>
    %32 = arith.mulf %30, %31 : vector<16x16xf32>
    %33 = arith.addf %32, %24 : vector<16x16xf32>
    %cst_21 = arith.constant dense<0xFF800000> : vector<16xf32>
    %34 = vector.multi_reduction <maximumf>, %33, %cst_21 [1] : vector<16x16xf32> to vector<16xf32>
    %35 = vector.shape_cast %34 : vector<16xf32> to vector<16x1xf32>
    %36 = vector.broadcast %35 : vector<16x1xf32> to vector<16x16xf32>
    %37 = arith.subf %33, %36 : vector<16x16xf32>
    %38 = math.exp %37 : vector<16x16xf32>
    %cst_22 = arith.constant dense<0.000000e+00> : vector<16xf32>
    %39 = vector.multi_reduction <add>, %38, %cst_22 [1] : vector<16x16xf32> to vector<16xf32>
    %40 = vector.shape_cast %39 : vector<16xf32> to vector<16x1xf32>
    %41 = tpu.reciprocal %40 {approx = true} : vector<16x1xf32> -> vector<16x1xf32>
    %42 = vector.broadcast %41 : vector<16x1xf32> to vector<16x16xf32>
    %43 = arith.mulf %38, %42 : vector<16x16xf32>
    %cst_23 = arith.constant dense<0.000000e+00> : vector<16x8xf32>
    %44 = tpu.matmul %43, %29, %cst_23 {dimension_numbers = #tpu.dot_dimension_numbers<[1], [0], [0], [1], [0, 0, 1, 1], [], []>} : vector<16x16xf32>, vector<16x8xf32>, vector<16x8xf32> -> vector<16x8xf32>
    %45 = vector.extract_strided_slice %25 {offsets = [0, 0], sizes = [8, 32], strides = [1, 1]} : vector<32x32xf32> to vector<8x32xf32>
    %cst_24 = arith.constant dense<0.000000e+00> : vector<16x32xf32>
    %46 = tpu.matmul %44, %45, %cst_24 {dimension_numbers = #tpu.dot_dimension_numbers<[1], [0], [0], [1], [0, 0, 1, 1], [], []>} : vector<16x8xf32>, vector<8x32xf32>, vector<16x32xf32> -> vector<16x32xf32>
    %47 = arith.addf %26, %46 : vector<16x32xf32>
    %48 = vector.extract_strided_slice %19 {offsets = [0, 8], sizes = [16, 8], strides = [1, 1]} : vector<16x96xf32> to vector<16x8xf32>
    %49 = vector.extract_strided_slice %19 {offsets = [0, 40], sizes = [16, 8], strides = [1, 1]} : vector<16x96xf32> to vector<16x8xf32>
    %50 = vector.extract_strided_slice %19 {offsets = [0, 72], sizes = [16, 8], strides = [1, 1]} : vector<16x96xf32> to vector<16x8xf32>
    %cst_25 = arith.constant dense<0.000000e+00> : vector<16x16xf32>
    %51 = tpu.matmul %48, %49, %cst_25 {dimension_numbers = #tpu.dot_dimension_numbers<[1], [1], [0], [0], [0, 0, 1, 0], [], []>} : vector<16x8xf32>, vector<16x8xf32>, vector<16x16xf32> -> vector<16x16xf32>
    %cst_26 = arith.constant 0.353553385 : f32
    %52 = vector.broadcast %cst_26 : f32 to vector<16x16xf32>
    %53 = arith.mulf %51, %52 : vector<16x16xf32>
    %54 = arith.addf %53, %24 : vector<16x16xf32>
    %cst_27 = arith.constant dense<0xFF800000> : vector<16xf32>
    %55 = vector.multi_reduction <maximumf>, %54, %cst_27 [1] : vector<16x16xf32> to vector<16xf32>
    %56 = vector.shape_cast %55 : vector<16xf32> to vector<16x1xf32>
    %57 = vector.broadcast %56 : vector<16x1xf32> to vector<16x16xf32>
    %58 = arith.subf %54, %57 : vector<16x16xf32>
    %59 = math.exp %58 : vector<16x16xf32>
    %cst_28 = arith.constant dense<0.000000e+00> : vector<16xf32>
    %60 = vector.multi_reduction <add>, %59, %cst_28 [1] : vector<16x16xf32> to vector<16xf32>
    %61 = vector.shape_cast %60 : vector<16xf32> to vector<16x1xf32>
    %62 = tpu.reciprocal %61 {approx = true} : vector<16x1xf32> -> vector<16x1xf32>
    %63 = vector.broadcast %62 : vector<16x1xf32> to vector<16x16xf32>
    %64 = arith.mulf %59, %63 : vector<16x16xf32>
    %cst_29 = arith.constant dense<0.000000e+00> : vector<16x8xf32>
    %65 = tpu.matmul %64, %50, %cst_29 {dimension_numbers = #tpu.dot_dimension_numbers<[1], [0], [0], [1], [0, 0, 1, 1], [], []>} : vector<16x16xf32>, vector<16x8xf32>, vector<16x8xf32> -> vector<16x8xf32>
    %66 = vector.extract_strided_slice %25 {offsets = [8, 0], sizes = [8, 32], strides = [1, 1]} : vector<32x32xf32> to vector<8x32xf32>
    %cst_30 = arith.constant dense<0.000000e+00> : vector<16x32xf32>
    %67 = tpu.matmul %65, %66, %cst_30 {dimension_numbers = #tpu.dot_dimension_numbers<[1], [0], [0], [1], [0, 0, 1, 1], [], []>} : vector<16x8xf32>, vector<8x32xf32>, vector<16x32xf32> -> vector<16x32xf32>
    %68 = arith.addf %47, %67 : vector<16x32xf32>
    %69 = vector.extract_strided_slice %19 {offsets = [0, 16], sizes = [16, 8], strides = [1, 1]} : vector<16x96xf32> to vector<16x8xf32>
    %70 = vector.extract_strided_slice %19 {offsets = [0, 48], sizes = [16, 8], strides = [1, 1]} : vector<16x96xf32> to vector<16x8xf32>
    %71 = vector.extract_strided_slice %19 {offsets = [0, 80], sizes = [16, 8], strides = [1, 1]} : vector<16x96xf32> to vector<16x8xf32>
    %cst_31 = arith.constant dense<0.000000e+00> : vector<16x16xf32>
    %72 = tpu.matmul %69, %70, %cst_31 {dimension_numbers = #tpu.dot_dimension_numbers<[1], [1], [0], [0], [0, 0, 1, 0], [], []>} : vector<16x8xf32>, vector<16x8xf32>, vector<16x16xf32> -> vector<16x16xf32>
    %cst_32 = arith.constant 0.353553385 : f32
    %73 = vector.broadcast %cst_32 : f32 to vector<16x16xf32>
    %74 = arith.mulf %72, %73 : vector<16x16xf32>
    %75 = arith.addf %74, %24 : vector<16x16xf32>
    %cst_33 = arith.constant dense<0xFF800000> : vector<16xf32>
    %76 = vector.multi_reduction <maximumf>, %75, %cst_33 [1] : vector<16x16xf32> to vector<16xf32>
    %77 = vector.shape_cast %76 : vector<16xf32> to vector<16x1xf32>
    %78 = vector.broadcast %77 : vector<16x1xf32> to vector<16x16xf32>
    %79 = arith.subf %75, %78 : vector<16x16xf32>
    %80 = math.exp %79 : vector<16x16xf32>
    %cst_34 = arith.constant dense<0.000000e+00> : vector<16xf32>
    %81 = vector.multi_reduction <add>, %80, %cst_34 [1] : vector<16x16xf32> to vector<16xf32>
    %82 = vector.shape_cast %81 : vector<16xf32> to vector<16x1xf32>
    %83 = tpu.reciprocal %82 {approx = true} : vector<16x1xf32> -> vector<16x1xf32>
    %84 = vector.broadcast %83 : vector<16x1xf32> to vector<16x16xf32>
    %85 = arith.mulf %80, %84 : vector<16x16xf32>
    %cst_35 = arith.constant dense<0.000000e+00> : vector<16x8xf32>
    %86 = tpu.matmul %85, %71, %cst_35 {dimension_numbers = #tpu.dot_dimension_numbers<[1], [0], [0], [1], [0, 0, 1, 1], [], []>} : vector<16x16xf32>, vector<16x8xf32>, vector<16x8xf32> -> vector<16x8xf32>
    %87 = vector.extract_strided_slice %25 {offsets = [16, 0], sizes = [8, 32], strides = [1, 1]} : vector<32x32xf32> to vector<8x32xf32>
    %cst_36 = arith.constant dense<0.000000e+00> : vector<16x32xf32>
    %88 = tpu.matmul %86, %87, %cst_36 {dimension_numbers = #tpu.dot_dimension_numbers<[1], [0], [0], [1], [0, 0, 1, 1], [], []>} : vector<16x8xf32>, vector<8x32xf32>, vector<16x32xf32> -> vector<16x32xf32>
    %89 = arith.addf %68, %88 : vector<16x32xf32>
    %90 = vector.extract_strided_slice %19 {offsets = [0, 24], sizes = [16, 8], strides = [1, 1]} : vector<16x96xf32> to vector<16x8xf32>
    %91 = vector.extract_strided_slice %19 {offsets = [0, 56], sizes = [16, 8], strides = [1, 1]} : vector<16x96xf32> to vector<16x8xf32>
    %92 = vector.extract_strided_slice %19 {offsets = [0, 88], sizes = [16, 8], strides = [1, 1]} : vector<16x96xf32> to vector<16x8xf32>
    %cst_37 = arith.constant dense<0.000000e+00> : vector<16x16xf32>
    %93 = tpu.matmul %90, %91, %cst_37 {dimension_numbers = #tpu.dot_dimension_numbers<[1], [1], [0], [0], [0, 0, 1, 0], [], []>} : vector<16x8xf32>, vector<16x8xf32>, vector<16x16xf32> -> vector<16x16xf32>
    %cst_38 = arith.constant 0.353553385 : f32
    %94 = vector.broadcast %cst_38 : f32 to vector<16x16xf32>
    %95 = arith.mulf %93, %94 : vector<16x16xf32>
    %96 = arith.addf %95, %24 : vector<16x16xf32>
    %cst_39 = arith.constant dense<0xFF800000> : vector<16xf32>
    %97 = vector.multi_reduction <maximumf>, %96, %cst_39 [1] : vector<16x16xf32> to vector<16xf32>
    %98 = vector.shape_cast %97 : vector<16xf32> to vector<16x1xf32>
    %99 = vector.broadcast %98 : vector<16x1xf32> to vector<16x16xf32>
    %100 = arith.subf %96, %99 : vector<16x16xf32>
    %101 = math.exp %100 : vector<16x16xf32>
    %cst_40 = arith.constant dense<0.000000e+00> : vector<16xf32>
    %102 = vector.multi_reduction <add>, %101, %cst_40 [1] : vector<16x16xf32> to vector<16xf32>
    %103 = vector.shape_cast %102 : vector<16xf32> to vector<16x1xf32>
    %104 = tpu.reciprocal %103 {approx = true} : vector<16x1xf32> -> vector<16x1xf32>
    %105 = vector.broadcast %104 : vector<16x1xf32> to vector<16x16xf32>
    %106 = arith.mulf %101, %105 : vector<16x16xf32>
    %cst_41 = arith.constant dense<0.000000e+00> : vector<16x8xf32>
    %107 = tpu.matmul %106, %92, %cst_41 {dimension_numbers = #tpu.dot_dimension_numbers<[1], [0], [0], [1], [0, 0, 1, 1], [], []>} : vector<16x16xf32>, vector<16x8xf32>, vector<16x8xf32> -> vector<16x8xf32>
    %108 = vector.extract_strided_slice %25 {offsets = [24, 0], sizes = [8, 32], strides = [1, 1]} : vector<32x32xf32> to vector<8x32xf32>
    %cst_42 = arith.constant dense<0.000000e+00> : vector<16x32xf32>
    %109 = tpu.matmul %107, %108, %cst_42 {dimension_numbers = #tpu.dot_dimension_numbers<[1], [0], [0], [1], [0, 0, 1, 1], [], []>} : vector<16x8xf32>, vector<8x32xf32>, vector<16x32xf32> -> vector<16x32xf32>
    %110 = arith.addf %89, %109 : vector<16x32xf32>
    %c0_43 = arith.constant 0 : index
    %c0_44 = arith.constant 0 : index
    %111 = vector.load %arg9[%c0_43, %c0_44] : memref<1x32xf32, #tpu.memory_space<vmem>>, vector<1x32xf32>
    %112 = vector.broadcast %111 : vector<1x32xf32> to vector<16x32xf32>
    %113 = arith.addf %110, %112 : vector<16x32xf32>
    %114 = arith.addf %113, %1 : vector<16x32xf32>
    %c0_45 = arith.constant 0 : index
    %c0_46 = arith.constant 0 : index
    %115 = vector.load %arg10[%c0_45, %c0_46] : memref<1x32xf32, #tpu.memory_space<vmem>>, vector<1x32xf32>
    %116 = arith.mulf %114, %114 : vector<16x32xf32>
    %cst_47 = arith.constant dense<0.000000e+00> : vector<16xf32>
    %117 = vector.multi_reduction <add>, %116, %cst_47 [1] : vector<16x32xf32> to vector<16xf32>
    %118 = vector.shape_cast %117 : vector<16xf32> to vector<16x1xf32>
    %cst_48 = arith.constant 3.200000e+01 : f32
    %119 = vector.broadcast %cst_48 : f32 to vector<16x1xf32>
    %120 = arith.divf %118, %119 : vector<16x1xf32>
    %cst_49 = arith.constant 9.99999997E-7 : f32
    %121 = vector.broadcast %cst_49 : f32 to vector<16x1xf32>
    %122 = arith.addf %120, %121 : vector<16x1xf32>
    %123 = math.rsqrt %122 : vector<16x1xf32>
    %124 = vector.broadcast %123 : vector<16x1xf32> to vector<16x32xf32>
    %125 = arith.mulf %114, %124 : vector<16x32xf32>
    %126 = vector.broadcast %115 : vector<1x32xf32> to vector<16x32xf32>
    %127 = arith.mulf %125, %126 : vector<16x32xf32>
    %c0_50 = arith.constant 0 : index
    %c0_51 = arith.constant 0 : index
    %128 = vector.load %arg11[%c0_50, %c0_51] : memref<32x128xf32, #tpu.memory_space<vmem>>, vector<32x128xf32>
    %cst_52 = arith.constant dense<0.000000e+00> : vector<16x128xf32>
    %129 = tpu.matmul %127, %128, %cst_52 {dimension_numbers = #tpu.dot_dimension_numbers<[1], [0], [0], [1], [0, 0, 1, 1], [], []>} : vector<16x32xf32>, vector<32x128xf32>, vector<16x128xf32> -> vector<16x128xf32>
    %c0_53 = arith.constant 0 : index
    %c0_54 = arith.constant 0 : index
    %130 = vector.load %arg12[%c0_53, %c0_54] : memref<1x128xf32, #tpu.memory_space<vmem>>, vector<1x128xf32>
    %131 = vector.broadcast %130 : vector<1x128xf32> to vector<16x128xf32>
    %132 = arith.addf %129, %131 : vector<16x128xf32>
    %133 = arith.mulf %132, %132 : vector<16x128xf32>
    %134 = arith.mulf %132, %133 : vector<16x128xf32>
    %cst_55 = arith.constant 4.471500e-02 : f32
    %135 = vector.broadcast %cst_55 : f32 to vector<16x128xf32>
    %136 = arith.mulf %135, %134 : vector<16x128xf32>
    %137 = arith.addf %132, %136 : vector<16x128xf32>
    %cst_56 = arith.constant 0.797884583 : f32
    %138 = vector.broadcast %cst_56 : f32 to vector<16x128xf32>
    %139 = arith.mulf %138, %137 : vector<16x128xf32>
    %140 = math.tanh %139 : vector<16x128xf32>
    %cst_57 = arith.constant 1.000000e+00 : f32
    %141 = vector.broadcast %cst_57 : f32 to vector<16x128xf32>
    %142 = arith.addf %141, %140 : vector<16x128xf32>
    %cst_58 = arith.constant 5.000000e-01 : f32
    %143 = vector.broadcast %cst_58 : f32 to vector<16x128xf32>
    %144 = arith.mulf %143, %142 : vector<16x128xf32>
    %145 = arith.mulf %132, %144 : vector<16x128xf32>
    %c0_59 = arith.constant 0 : index
    %c0_60 = arith.constant 0 : index
    %146 = vector.load %arg13[%c0_59, %c0_60] : memref<128x32xf32, #tpu.memory_space<vmem>>, vector<128x32xf32>
    %cst_61 = arith.constant dense<0.000000e+00> : vector<16x32xf32>
    %147 = tpu.matmul %145, %146, %cst_61 {dimension_numbers = #tpu.dot_dimension_numbers<[1], [0], [0], [1], [0, 0, 1, 1], [], []>} : vector<16x128xf32>, vector<128x32xf32>, vector<16x32xf32> -> vector<16x32xf32>
    %c0_62 = arith.constant 0 : index
    %c0_63 = arith.constant 0 : index
    %148 = vector.load %arg14[%c0_62, %c0_63] : memref<1x32xf32, #tpu.memory_space<vmem>>, vector<1x32xf32>
    %149 = vector.broadcast %148 : vector<1x32xf32> to vector<16x32xf32>
    %150 = arith.addf %147, %149 : vector<16x32xf32>
    %c0_64 = arith.constant 0 : index
    %c0_65 = arith.constant 0 : index
    %c0_66 = arith.constant 0 : index
    %151 = vector.load %arg3[%c0_64, %c0_65, %c0_66] : memref<1x16x1xf32, #tpu.memory_space<vmem>>, vector<1x16x1xf32>
    %152 = vector.shape_cast %151 : vector<1x16x1xf32> to vector<16x1xf32>
    %153 = vector.broadcast %152 : vector<16x1xf32> to vector<16x32xf32>
    %154 = arith.mulf %150, %153 : vector<16x32xf32>
    %155 = arith.addf %154, %114 : vector<16x32xf32>
    %c0_67 = arith.constant 0 : index
    %c0_68 = arith.constant 0 : index
    %c0_69 = arith.constant 0 : index
    %156 = vector.load %arg15[%c0_67, %c0_68, %c0_69] : memref<1x16x32xf32, #tpu.memory_space<vmem>>, vector<1x16x32xf32>
    %157 = vector.shape_cast %156 : vector<1x16x32xf32> to vector<16x32xf32>
    %158 = vector.shape_cast %155 : vector<16x32xf32> to vector<1x16x32xf32>
    tpu.vector_store %arg15[%c0_67, %c0_68, %c0_69], %158 {strides = array<i32>} : memref<1x16x32xf32, #tpu.memory_space<vmem>>, vector<1x16x32xf32>,
    return
  }
  func.func @transform_0(%arg0: i32) -> (i32, i32, i32) {
    %c0_i32 = arith.constant 0 : i32
    %c0_i32_0 = arith.constant 0 : i32
    %c0_i32_1 = arith.constant 0 : i32
    return %arg0, %c0_i32, %c0_i32_0 : i32, i32, i32
  }
  func.func @transform_1(%arg0: i32) -> (i32, i32, i32) {
    %c0_i32 = arith.constant 0 : i32
    %c0_i32_0 = arith.constant 0 : i32
    %c0_i32_1 = arith.constant 0 : i32
    return %arg0, %c0_i32, %c0_i32_0 : i32, i32, i32
  }
  func.func @transform_2(%arg0: i32) -> (i32, i32, i32) {
    %c0_i32 = arith.constant 0 : i32
    %c0_i32_0 = arith.constant 0 : i32
    %c0_i32_1 = arith.constant 0 : i32
    return %arg0, %c0_i32, %c0_i32_0 : i32, i32, i32
  }
  func.func @transform_3(%arg0: i32) -> (i32, i32) {
    %c0_i32 = arith.constant 0 : i32
    %c0_i32_0 = arith.constant 0 : i32
    %c0_i32_1 = arith.constant 0 : i32
    return %c0_i32, %c0_i32_0 : i32, i32
  }
  func.func @transform_4(%arg0: i32) -> (i32, i32) {
    %c0_i32 = arith.constant 0 : i32
    %c0_i32_0 = arith.constant 0 : i32
    %c0_i32_1 = arith.constant 0 : i32
    return %c0_i32, %c0_i32_0 : i32, i32
  }
  func.func @transform_5(%arg0: i32) -> (i32, i32) {
    %c0_i32 = arith.constant 0 : i32
    %c0_i32_0 = arith.constant 0 : i32
    %c0_i32_1 = arith.constant 0 : i32
    return %c0_i32, %c0_i32_0 : i32, i32
  }
  func.func @transform_6(%arg0: i32) -> (i32, i32) {
    %c0_i32 = arith.constant 0 : i32
    %c0_i32_0 = arith.constant 0 : i32
    %c0_i32_1 = arith.constant 0 : i32
    return %c0_i32, %c0_i32_0 : i32, i32
  }
  func.func @transform_7(%arg0: i32) -> (i32, i32) {
    %c0_i32 = arith.constant 0 : i32
    %c0_i32_0 = arith.constant 0 : i32
    %c0_i32_1 = arith.constant 0 : i32
    return %c0_i32, %c0_i32_0 : i32, i32
  }
  func.func @transform_8(%arg0: i32) -> (i32, i32) {
    %c0_i32 = arith.constant 0 : i32
    %c0_i32_0 = arith.constant 0 : i32
    %c0_i32_1 = arith.constant 0 : i32
    return %c0_i32, %c0_i32_0 : i32, i32
  }
  func.func @transform_9(%arg0: i32) -> (i32, i32) {
    %c0_i32 = arith.constant 0 : i32
    %c0_i32_0 = arith.constant 0 : i32
    %c0_i32_1 = arith.constant 0 : i32
    return %c0_i32, %c0_i32_0 : i32, i32
  }
  func.func @transform_10(%arg0: i32) -> (i32, i32) {
    %c0_i32 = arith.constant 0 : i32
    %c0_i32_0 = arith.constant 0 : i32
    %c0_i32_1 = arith.constant 0 : i32
    return %c0_i32, %c0_i32_0 : i32, i32
  }
  func.func @transform_11(%arg0: i32) -> (i32, i32) {
    %c0_i32 = arith.constant 0 : i32
    %c0_i32_0 = arith.constant 0 : i32
    %c0_i32_1 = arith.constant 0 : i32
    return %c0_i32, %c0_i32_0 : i32, i32
  }
  func.func @transform_12(%arg0: i32) -> (i32, i32) {
    %c0_i32 = arith.constant 0 : i32
    %c0_i32_0 = arith.constant 0 : i32
    %c0_i32_1 = arith.constant 0 : i32
    return %c0_i32, %c0_i32_0 : i32, i32
  }
  func.func @transform_13(%arg0: i32) -> (i32, i32) {
    %c0_i32 = arith.constant 0 : i32
    %c0_i32_0 = arith.constant 0 : i32
    %c0_i32_1 = arith.constant 0 : i32
    return %c0_i32, %c0_i32_0 : i32, i32
  }
  func.func @transform_14(%arg0: i32) -> (i32, i32, i32) {
    %c0_i32 = arith.constant 0 : i32
    %c0_i32_0 = arith.constant 0 : i32
    %c0_i32_1 = arith.constant 0 : i32
    return %arg0, %c0_i32, %c0_i32_0 : i32, i32, i32
  }
}

</mosaic_0001>

<bundles_post_ra>
// kernel: tpu_custom_call.1
= control target key start
LH: loop header
LB: loop body
LE: loop exit
PB: predicated region body
PF: predicated region fallthrough
CT: control target
= control target key end

     0   :  { %vm53_vm0 = vcmask 261120   ;;  %s1348_s0 = inlined_call_operand.vmem [shape: f32[1,16,32], index: 0, kind: input, shape index: {}]   ;;  %s1349_s1 = inlined_call_operand.vmem [shape: f32[1,1,16], index: 1, kind: input, shape index: {}]   ;;  %s1350_s2 = inlined_call_operand.vmem [shape: f32[1,16,1], index: 2, kind: input, shape index: {}]   ;;  %s1351_s3 = inlined_call_operand.vmem [shape: f32[16,16], index: 3, kind: input, shape index: {}]   ;;  %s1352_s4 = inlined_call_operand.vmem [shape: f32[1,32], index: 4, kind: input, shape index: {}]   ;;  %s1353_s5 = inlined_call_operand.vmem [shape: f32[32,96], index: 5, kind: input, shape index: {}]   ;;  %s1354_s6 = inlined_call_operand.vmem [shape: f32[1,96], index: 6, kind: input, shape index: {}]   ;;  %s1355_s7 = inlined_call_operand.vmem [shape: f32[32,32], index: 7, kind: input, shape index: {}]   ;;  %s1356_s8 = inlined_call_operand.vmem [shape: f32[1,32], index: 8, kind: input, shape index: {}]   ;;  %s1357_s9 = inlined_call_operand.vmem [shape: f32[1,32], index: 9, kind: input, shape index: {}]   ;;  %s1358_s10 = inlined_call_operand.vmem [shape: f32[32,128], index: 10, kind: input, shape index: {}]   ;;  %s1359_s11 = inlined_call_operand.vmem [shape: f32[1,128], index: 11, kind: input, shape index: {}]   ;;  %s1360_s12 = inlined_call_operand.vmem [shape: f32[128,32], index: 12, kind: input, shape index: {}]   ;;  %s1361_s13 = inlined_call_operand.vmem [shape: f32[1,32], index: 13, kind: input, shape index: {}]   ;;  %s1362_s14 = inlined_call_operand.hbm [shape: f32[1,16,32], index: 14, kind: output, shape index: {}]  }
   0x1   :  { %v1096_v0 = vld [vmem:[%s1348_s0] sm:$0xff]  ;;  %v1101_v1 = vld [vmem:[%s1348_s0 + $0x8] sm:$0xff] }
   0x2   :  { %v51_v2 = vmul.f32 %v1096_v0, %v1096_v0 }
   0x4   :  { %v54_v3 = vsel %vm53_vm0, %v51_v2, 0.0 }
   0x5   :  { %19 = vsyncpa [#allocation3], 0  ;;  %55 = vadd.xlane.f32.xlu0 %v54_v3  ;;  %v52_v4 = vmul.f32 %v1101_v1, %v1101_v1  ;;  %v1002_v6 = vmov 32.0   ;;  %v101_v10 = vld [vmem:[%s1353_s5 + $0x18] sm:$0xff]  ;;  %v100_v11 = vld [vmem:[%s1353_s5 + $0x10] sm:$0xff]  ;;  %s1003_s26 = smov 96  }
   0x6   :  { %930 = vrcp.f32 %v1002_v6  ;;  %124 = vmatpush.msra.mxu0 %v101_v10  ;;  %v99_v13 = vld [vmem:[%s1353_s5 + $0x8] sm:$0xff]  ;;  %v98_v14 = vld [vmem:[%s1353_s5] sm:$0xff]  ;;  %s1004_s27 = smov 64   ;;  %s1005_s28 = smov 88   ;;  %vm153_vm8 = vcmask 64512   ;;  %vm189_vm9 = vcmask 130048  }
   0x7   :  { %v57_v5 = vsel %vm53_vm0, %v52_v4, 0.0  ;;  %v923_v31 = vld [vmem:[%s1352_s4] ss:$0 sm:$0xff]  ;;  %s1006_s29 = smov 120   ;;  %s1008_s30 = smov 104   ;;  %v136_v59 = vld [vmem:[%s1351_s3 + $0x8] sm:$0xff] }
   0x8   :  { %125 = vmatpush.msra.mxu0 %v100_v11  ;;  %v924_v43 = vld [vmem:[%s1354_s6] ss:$0 sm:$0xff]  ;;  %s1007_s6 = smov 80   ;;  %s1011_s22 = smov 56  }
   0x9   :  { %v925_v53 = vld [vmem:[%s1349_s1] ss:$0 sm:$0xff]  ;;  %s1009_s1 = smov 72   ;;  %s1012_s23 = smov 48  }
   0xa   :  { %126 = vmatpush.msra.mxu0 %v99_v13  ;;  %v135_v54 = vld [vmem:[%s1351_s3] sm:$0xff]  ;;  %v1165_v61 = vadd.f32 %v925_v53, %v136_v59  ;;  %s1010_s3 = smov 112   ;;  %s1013_s5 = smov 40  }
   0xb   :  { %v1158_v55 = vadd.f32 %v925_v53, %v135_v54 }
   0xc   :  { %v931_v7 = vpop.eup %930  ;;  %127 = vmatpush.msra.mxu0 %v98_v14  ;;  %v143_v14 = vld [vmem:[%s1355_s7] sm:$0xff] }
   0xd   :  { %58 = vadd.xlane.f32.xlu0 %v57_v5  ;;  %v61_v8 = vmul.f32 32.0, %v931_v7  ;;  %vm65_vm1 = vweird.f32 %v931_v7  ;;  %397 = vmatpush.msra.mxu1 %v143_v14 }
   0xf   :  { %v62_v9 = vsub.f32 1.0, %v61_v8 }
  0x11   :  { %v63_v12 = vmul.f32 %v931_v7, %v62_v9 }
  0x13   :  { %v64_v15 = vadd.f32 %v931_v7, %v63_v12 }
  0x15   :  { %v1121_v16 = vsel %vm65_vm1, %v931_v7, %v64_v15 }
  0x78   :  { %v56_v17 = vpop.xlane.xlu0 %55 }
  0x79   :  { %v67_v18 = vmul.f32 %v1121_v16, %v56_v17 }
  0x7b   :  { %v69_v19 = vadd.f32 1e-06, %v67_v18 }
  0x7d   :  { %932 = vrsqrt.f32 %v69_v19  ;;  %vm77_vm3 = vweird.f32 %v69_v19 }
  0x80   :  { %v59_v20 = vpop.xlane.xlu0 %58 }
  0x81   :  { %v68_v21 = vmul.f32 %v1121_v16, %v59_v20 }
  0x83   :  { %v933_v22 = vpop.eup %932  ;;  %v70_v23 = vadd.f32 1e-06, %v68_v21 }
  0x84   :  { %v72_v24 = vmul.f32 %v933_v22, %v69_v19  ;;  %vm78_vm2 = vweird.f32 %v933_v22 }
  0x85   :  { %934 = vrsqrt.f32 %v70_v23  ;;  %vm79_vm4 = vmor %vm77_vm3, %vm78_vm2  ;;  %vm87_vm6 = vweird.f32 %v70_v23 }
  0x86   :  { %v73_v25 = vmul.f32 %v933_v22, %v72_v24 }
  0x88   :  { %v74_v26 = vmul.f32 0.5, %v73_v25 }
  0x8a   :  { %v75_v27 = vsub.f32 1.5, %v74_v26 }
  0x8b   :  { %v935_v28 = vpop.eup %934 }
  0x8c   :  { %v76_v29 = vmul.f32 %v933_v22, %v75_v27  ;;  %v82_v30 = vmul.f32 %v935_v28, %v70_v23  ;;  %vm88_vm5 = vweird.f32 %v935_v28 }
  0x8d   :  { %vm89_vm7 = vmor %vm87_vm6, %vm88_vm5 }
  0x8e   :  { %v83_v32 = vmul.f32 %v935_v28, %v82_v30  ;;  %v80_v33 = vsel %vm79_vm4, %v933_v22, %v76_v29 }
  0x8f   :  { %v91_v34 = vmul.f32 %v80_v33, %v1096_v0 }
  0x90   :  { %v84_v35 = vmul.f32 0.5, %v83_v32 }
  0x91   :  { %v96_v36 = vmul.f32 %v923_v31, %v91_v34 }
  0x92   :  { %v85_v37 = vsub.f32 1.5, %v84_v35 }
  0x93   :  { %849 = vmatmul.msk.f32.vlgmr.msra.gmra.mxu0 %vm53_vm0, %v96_v36 }
  0x94   :  { %v86_v38 = vmul.f32 %v935_v28, %v85_v37 }
  0x96   :  { %v90_v39 = vsel %vm89_vm7, %v935_v28, %v86_v38 }
  0x97   :  { %v92_v40 = vmul.f32 %v90_v39, %v1101_v1 }
  0x99   :  { %v97_v41 = vmul.f32 %v923_v31, %v92_v40 }
  0x9b   :  { %850 = vmatmul.msk.f32.gmra.mxu0 %vm53_vm0, %v97_v41 }
 0x110   :  { %v129_v42 = vpop.f32.mrf.mxu0 }
 0x111   :  { %v130_v46 = vadd.f32 %v924_v43, %v129_v42 }
 0x118   :  { %v132_v44 = vpop.f32.mrf.mxu0 }
 0x119   :  { %v1135_v45 = vadd.f32 %v924_v43, %v132_v44 }
 0x11b   :  { %151 = vrot.lane.b32.xlu1 %v1135_v45, %s1003_s26  ;;  %v1139_v47 = vpack.i.bf16 %v130_v46, %v1135_v45 }
 0x123   :  { %149 = vrot.lane.b32.xlu1 %v130_v46, %s1003_s26 }
 0x12b   :  { %902 = vrot.lane.b32.xlu1 %v1139_v47, %s1004_s27 }
 0x133   :  { %251 = vrot.lane.b32.xlu1 %v130_v46, %s1005_s28 }
 0x13b   :  { %249 = vrot.lane.b32.xlu1 %v1135_v45, %s1006_s29 }
 0x143   :  { %411 = vrot.lane.b32.xlu1 %v1135_v45, %s1007_s6 }
 0x14b   :  { %409 = vrot.lane.b32.xlu1 %v130_v46, %s1007_s6 }
 0x153   :  { %536 = vrot.lane.b32.xlu1 %v130_v46, %s1008_s30 }
 0x18d   :  { %v152_v48 = vpop.permute.xlu1 %151 }
 0x18e   :  { %851 = vmatpush.xpose.msk.msra.mxu3 %vm153_vm8, %v152_v48 }
 0x195   :  { %v150_v49 = vpop.permute.xlu1 %149 }
 0x196   :  { %852 = vmatpush.xpose.msk.msra.mxu3 %vm153_vm8, %v150_v49 }
 0x199   :  { %853 = vmatmul.msk.f32.vlgmr.msra.gmra.mxu3 %vm153_vm8, %v130_v46 }
 0x19d   :  { %v903_v50 = vpop.permute.xlu1 %902 }
 0x19e   :  { %v904_v51 = vunpack.i.l.bf16 %v903_v50  ;;  %v905_v52 = vunpack.i.h.bf16 %v903_v50 }
 0x1a0   :  { %238 = vmatpush.msra.mxu2 %v904_v51 }
 0x1a1   :  { %854 = vmatmul.msk.f32.gmra.mxu3 %vm153_vm8, %v1135_v45 }
 0x1a2   :  { %239 = vmatpush.msra.mxu2 %v905_v52 }
 0x1a5   :  { %v252_v15 = vpop.permute.xlu1 %251 }
 0x1ad   :  { %v250_v19 = vpop.permute.xlu1 %249 }
 0x1b5   :  { %v412_v24 = vpop.permute.xlu1 %411 }
 0x1bd   :  { %v410_v28 = vpop.permute.xlu1 %409 }
 0x1c5   :  { %v537_v34 = vpop.permute.xlu1 %536 }
 0x21c   :  { %v179_v56 = vpop.f32.mrf.mxu3 }
 0x21d   :  { %v185_v57 = vmul.f32 0.35355338, %v179_v56 }
 0x21f   :  { %v187_v58 = vadd.f32 %v185_v57, %v1158_v55 }
 0x221   :  { %v190_v60 = vsel %vm189_vm9, %v187_v58, -inf }
 0x222   :  { %191 = vmax.xlane.f32.xlu2 %v190_v60 }
 0x224   :  { %v182_v62 = vpop.f32.mrf.mxu3 }
 0x225   :  { %v186_v63 = vmul.f32 0.35355338, %v182_v62 }
 0x227   :  { %v188_v2 = vadd.f32 %v186_v63, %v1165_v61 }
 0x229   :  { %v193_v3 = vsel %vm189_vm9, %v188_v2, -inf }
 0x22a   :  { %194 = vmax.xlane.f32.xlu2 %v193_v3 }
 0x295   :  { %v192_v4 = vpop.xlane.xlu2 %191 }
 0x296   :  { %v196_v5 = vsub.f32 %v187_v58, %v192_v4 }
 0x298   :  { %v198_v6 = vmul.f32 1.442695, %v196_v5 }
 0x29a   :  { %936 = vpow2.f32 %v198_v6 }
 0x29d   :  { %v195_v7 = vpop.xlane.xlu2 %194 }
 0x29e   :  { %v197_v8 = vsub.f32 %v188_v2, %v195_v7 }
 0x2a0   :  { %v937_v9 = vpop.eup %936  ;;  %v200_v10 = vmul.f32 1.442695, %v197_v8 }
 0x2a1   :  { %v202_v11 = vsel %vm189_vm9, %v937_v9, 0.0 }
 0x2a2   :  { %938 = vpow2.f32 %v200_v10  ;;  %203 = vadd.xlane.f32.xlu0 %v202_v11 }
 0x2a8   :  { %v939_v12 = vpop.eup %938 }
 0x2a9   :  { %v205_v13 = vsel %vm189_vm9, %v939_v12, 0.0 }
 0x2aa   :  { %206 = vadd.xlane.f32.xlu2 %v205_v13 }
 0x2b6   :  { %253 = vrot.lane.b32.xlu0 %v1135_v45, %s1005_s28 }
 0x2be   :  { %542 = vrot.lane.b32.xlu0 %v1135_v45, %s1009_s1 }
 0x2c2   :  { %247 = vrot.lane.b32.xlu2 %v130_v46, %s1006_s29  ;;  %s837_s29 = sshll.u32 %s1362_s14, 4  ;;  %s838_s29 = int_to_ptr.hbm [resolvable:$true] %s837_s29 }
 0x2c6   :  { %405 = vrot.lane.b32.xlu0 %v130_v46, %s1010_s3 }
 0x2ca   :  { %540 = vrot.lane.b32.xlu2 %v130_v46, %s1009_s1 }
 0x2ce   :  { %538 = vrot.lane.b32.xlu0 %v1135_v45, %s1008_s30 }
 0x2d2   :  { %407 = vrot.lane.b32.xlu2 %v1135_v45, %s1010_s3 }
 0x315   :  { %v204_v17 = vpop.xlane.xlu0 %203 }
 0x316   :  { %940 = vrcp.f32 %v204_v17 }
 0x31c   :  { %v941_v18 = vpop.eup %940 }
 0x31d   :  { %v207_v20 = vpop.xlane.xlu2 %206  ;;  %v210_v21 = vmul.f32 %v941_v18, %v937_v9 }
 0x31e   :  { %942 = vrcp.f32 %v207_v20 }
 0x31f   :  { %855 = vmatmul.msk.f32.vlgmr.msra.gmra.mxu2 %vm189_vm9, %v210_v21 }
 0x324   :  { %v943_v22 = vpop.eup %942 }
 0x325   :  { %v211_v23 = vmul.f32 %v943_v22, %v939_v12  ;;  %v248_v26 = vpop.permute.xlu2 %247 }
 0x327   :  { %856 = vmatmul.msk.f32.gmra.mxu2 %vm189_vm9, %v211_v23 }
 0x328   :  { %v254_v25 = vpop.permute.xlu0 %253 }
 0x329   :  { %857 = vmatpush.xpose.msk.msrb.mxu3 %vm153_vm8, %v254_v25 }
 0x32d   :  { %858 = vmatpush.xpose.msk.msrb.mxu3 %vm153_vm8, %v252_v15  ;;  %v541_v29 = vpop.permute.xlu2 %540 }
 0x330   :  { %v543_v27 = vpop.permute.xlu0 %542  ;;  %859 = vmatmul.msk.f32.vlgmr.msrb.gmra.mxu3 %vm153_vm8, %v248_v26 }
 0x331   :  { %867 = vmatpush.xpose.msk.msra.mxu3 %vm153_vm8, %v412_v24  ;;  %875 = vmatpush.xpose.msk.msrb.mxu1 %vm153_vm8, %v543_v27 }
 0x335   :  { %868 = vmatpush.xpose.msk.msra.mxu3 %vm153_vm8, %v410_v28  ;;  %876 = vmatpush.xpose.msk.msrb.mxu1 %vm153_vm8, %v541_v29  ;;  %v408_v31 = vpop.permute.xlu2 %407 }
 0x338   :  { %860 = vmatmul.msk.f32.gmra.mxu3 %vm153_vm8, %v250_v19  ;;  %v406_v30 = vpop.permute.xlu0 %405 }
 0x340   :  { %869 = vmatmul.msk.f32.vlgmr.msra.gmra.mxu3 %vm153_vm8, %v406_v30  ;;  %v539_v39 = vpop.permute.xlu0 %538 }
 0x348   :  { %870 = vmatmul.msk.f32.gmra.mxu3 %vm153_vm8, %v408_v31 }
 0x3a2   :  { %v241_v32 = vpop.f32.mrf.mxu2 }
 0x3a3   :  { %865 = vmatmul.msk.f32.vlgmr.msra.gmra.mxu1 %vm153_vm8, %v241_v32 }
 0x3aa   :  { %v244_v33 = vpop.f32.mrf.mxu2 }
 0x3ab   :  { %866 = vmatmul.msk.f32.gmra.mxu1 %vm153_vm8, %v244_v33 }
 0x3b3   :  { %v280_v35 = vpop.f32.mrf.mxu3  ;;  %877 = vmatmul.msk.f32.vlgmr.msrb.gmra.mxu1 %vm153_vm8, %v537_v34 }
 0x3b4   :  { %v286_v36 = vmul.f32 0.35355338, %v280_v35 }
 0x3b6   :  { %v288_v37 = vadd.f32 %v286_v36, %v1158_v55 }
 0x3b8   :  { %v290_v38 = vsel %vm189_vm9, %v288_v37, -inf }
 0x3b9   :  { %291 = vmax.xlane.f32.xlu1 %v290_v38 }
 0x3bb   :  { %v283_v40 = vpop.f32.mrf.mxu3  ;;  %878 = vmatmul.msk.f32.gmra.mxu1 %vm153_vm8, %v539_v39 }
 0x3bc   :  { %v287_v41 = vmul.f32 0.35355338, %v283_v40 }
 0x3be   :  { %v289_v42 = vadd.f32 %v287_v41, %v1165_v61 }
 0x3c0   :  { %v293_v43 = vsel %vm189_vm9, %v289_v42, -inf }
 0x3c1   :  { %294 = vmax.xlane.f32.xlu2 %v293_v43 }
 0x3c3   :  { %v438_v44 = vpop.f32.mrf.mxu3 }
 0x3c4   :  { %v444_v45 = vmul.f32 0.35355338, %v438_v44 }
 0x3c6   :  { %v446_v46 = vadd.f32 %v444_v45, %v1158_v55 }
 0x3c8   :  { %v448_v48 = vsel %vm189_vm9, %v446_v46, -inf }
 0x3c9   :  { %449 = vmax.xlane.f32.xlu2 %v448_v48 }
 0x3cb   :  { %v441_v57 = vpop.f32.mrf.mxu3 }
 0x3cc   :  { %v445_v60 = vmul.f32 0.35355338, %v441_v57 }
 0x3ce   :  { %v447_v7 = vadd.f32 %v445_v60, %v1165_v61 }
 0x3d0   :  { %v451_v10 = vsel %vm189_vm9, %v447_v7, -inf }
 0x420   :  { %v1203_v49 = vpop.f32.mrf.mxu1 }
 0x428   :  { %v1205_v50 = vpop.f32.mrf.mxu1 }
 0x42c   :  { %v292_v51 = vpop.xlane.xlu1 %291 }
 0x42d   :  { %v296_v52 = vsub.f32 %v288_v37, %v292_v51 }
 0x42f   :  { %v298_v53 = vmul.f32 1.442695, %v296_v52 }
 0x430   :  { %v569_v54 = vpop.f32.mrf.mxu1 }
 0x431   :  { %944 = vpow2.f32 %v298_v53  ;;  %v575_v56 = vmul.f32 0.35355338, %v569_v54  ;;  %v144_v54 = vld [vmem:[%s1355_s7 + $0x8] sm:$0xff] }
 0x432   :  { %368 = vmatpush.msrb.mxu0 %v144_v54 }
 0x433   :  { %v577_v58 = vadd.f32 %v575_v56, %v1158_v55 }
 0x434   :  { %v295_v59 = vpop.xlane.xlu2 %294 }
 0x435   :  { %v297_v62 = vsub.f32 %v289_v42, %v295_v59  ;;  %v579_v63 = vsel %vm189_vm9, %v577_v58, -inf }
 0x436   :  { %580 = vmax.xlane.f32.xlu0 %v579_v63 }
 0x437   :  { %v945_v2 = vpop.eup %944  ;;  %v300_v3 = vmul.f32 1.442695, %v297_v62 }
 0x438   :  { %v572_v4 = vpop.f32.mrf.mxu1  ;;  %v302_v5 = vsel %vm189_vm9, %v945_v2, 0.0 }
 0x439   :  { %v576_v6 = vmul.f32 0.35355338, %v572_v4  ;;  %303 = vadd.xlane.f32.xlu2 %v302_v5  ;;  %946 = vpow2.f32 %v300_v3  ;;  %v146_v3 = vld [vmem:[%s1355_s7 + $0x18] sm:$0xff] }
 0x43b   :  { %v578_v8 = vadd.f32 %v576_v6, %v1165_v61 }
 0x43c   :  { %v450_v9 = vpop.xlane.xlu2 %449 }
 0x43d   :  { %v454_v55 = vsub.f32 %v446_v46, %v450_v9  ;;  %v582_v11 = vsel %vm189_vm9, %v578_v8, -inf }
 0x43e   :  { %452 = vmax.xlane.f32.xlu0 %v451_v10  ;;  %583 = vmax.xlane.f32.xlu1 %v582_v11 }
 0x43f   :  { %v456_v12 = vmul.f32 1.442695, %v454_v55  ;;  %v947_v13 = vpop.eup %946 }
 0x440   :  { %v305_v14 = vsel %vm189_vm9, %v947_v13, 0.0 }
 0x441   :  { %948 = vpow2.f32 %v456_v12 }
 0x446   :  { %306 = vadd.xlane.f32.xlu0 %v305_v14  ;;  %v926_v14 = vld [vmem:[%s1356_s8] ss:$0 sm:$0xff]  ;;  %s1017_s8 = smov 8  }
 0x447   :  { %v949_v15 = vpop.eup %948 }
 0x448   :  { %v460_v17 = vsel %vm189_vm9, %v949_v15, 0.0 }
 0x44e   :  { %461 = vadd.xlane.f32.xlu0 %v460_v17 }
 0x457   :  { %907 = vrot.lane.b32.xlu1 %v1139_v47, %s1011_s22 }
 0x45f   :  { %917 = vrot.lane.b32.xlu1 %v1139_v47, %s1012_s23 }
 0x4a9   :  { %v581_v61 = vpop.xlane.xlu0 %580 }
 0x4aa   :  { %v585_v18 = vsub.f32 %v577_v58, %v581_v61 }
 0x4ac   :  { %v587_v19 = vmul.f32 1.442695, %v585_v18  ;;  %v304_v30 = vpop.xlane.xlu2 %303 }
 0x4ae   :  { %950 = vpow2.f32 %v587_v19 }
 0x4b1   :  { %v584_v20 = vpop.xlane.xlu1 %583  ;;  %v453_v21 = vpop.xlane.xlu0 %452 }
 0x4b2   :  { %v586_v22 = vsub.f32 %v578_v8, %v584_v20  ;;  %v455_v25 = vsub.f32 %v447_v7, %v453_v21 }
 0x4b4   :  { %v951_v23 = vpop.eup %950  ;;  %v589_v24 = vmul.f32 1.442695, %v586_v22  ;;  %v458_v27 = vmul.f32 1.442695, %v455_v25 }
 0x4b5   :  { %v591_v26 = vsel %vm189_vm9, %v951_v23, 0.0 }
 0x4b6   :  { %592 = vadd.xlane.f32.xlu2 %v591_v26  ;;  %952 = vpow2.f32 %v589_v24 }
 0x4b7   :  { %954 = vpow2.f32 %v458_v27 }
 0x4b8   :  { %956 = vrcp.f32 %v304_v30 }
 0x4b9   :  { %v307_v33 = vpop.xlane.xlu0 %306 }
 0x4ba   :  { %958 = vrcp.f32 %v307_v33  ;;  %v785_v33 = vld [vmem:[%s1360_s12 + $0x78] sm:$0xff] }
 0x4bb   :  { %790 = vmatpush.msra.mxu1 %v785_v33 }
 0x4bc   :  { %v953_v28 = vpop.eup %952 }
 0x4bd   :  { %v594_v29 = vsel %vm189_vm9, %v953_v28, 0.0  ;;  %v955_v31 = vpop.eup %954 }
 0x4be   :  { %595 = vadd.xlane.f32.xlu0 %v594_v29  ;;  %v463_v32 = vsel %vm189_vm9, %v955_v31, 0.0  ;;  %v957_v35 = vpop.eup %956  ;;  %v715_v29 = vld [vmem:[%s1358_s10] sm:$0xff] }
 0x4bf   :  { %v310_v38 = vmul.f32 %v957_v35, %v945_v2  ;;  %v145_v2 = vld [vmem:[%s1355_s7 + $0x10] sm:$0xff]  ;;  %v783_v35 = vld [vmem:[%s1360_s12 + $0x68] sm:$0xff] }
 0x4c0   :  { %v959_v41 = vpop.eup %958  ;;  %526 = vmatpush.msra.mxu0 %v145_v2  ;;  %v779_v2 = vld [vmem:[%s1360_s12 + $0x48] sm:$0xff] }
 0x4c1   :  { %v462_v39 = vpop.xlane.xlu0 %461  ;;  %v311_v44 = vmul.f32 %v959_v41, %v947_v13 }
 0x4c2   :  { %960 = vrcp.f32 %v462_v39 }
 0x4c6   :  { %464 = vadd.xlane.f32.xlu0 %v463_v32 }
 0x4c8   :  { %v961_v45 = vpop.eup %960 }
 0x4c9   :  { %v908_v34 = vpop.permute.xlu1 %907  ;;  %v468_v46 = vmul.f32 %v961_v45, %v949_v15 }
 0x4ca   :  { %v909_v36 = vunpack.i.l.bf16 %v908_v34  ;;  %v910_v37 = vunpack.i.h.bf16 %v908_v34  ;;  %v784_v34 = vld [vmem:[%s1360_s12 + $0x70] sm:$0xff] }
 0x4cb   :  { %791 = vmatpush.msra.mxu1 %v784_v34 }
 0x4cc   :  { %338 = vmatpush.msrb.mxu2 %v909_v36 }
 0x4cd   :  { %792 = vmatpush.msra.mxu1 %v783_v35  ;;  %v929_v35 = vld [vmem:[%s1361_s13] ss:$0 sm:$0xff]  ;;  %s1016_s13 = smov 128  }
 0x4ce   :  { %912 = vrot.lane.b32.xlu2 %v1139_v47, %s1013_s5  ;;  %339 = vmatpush.msrb.mxu2 %v910_v37 }
 0x4cf   :  { %861 = vmatmul.msk.f32.vlgmr.msrb.gmra.mxu2 %vm189_vm9, %v310_v38 }
 0x4d1   :  { %v918_v40 = vpop.permute.xlu1 %917 }
 0x4d2   :  { %v919_v42 = vunpack.i.l.bf16 %v918_v40  ;;  %v920_v43 = vunpack.i.h.bf16 %v918_v40 }
 0x4d4   :  { %496 = vmatpush.msra.mxu2 %v919_v42 }
 0x4d6   :  { %497 = vmatpush.msra.mxu2 %v920_v43 }
 0x4d7   :  { %862 = vmatmul.msk.f32.gmra.mxu2 %vm189_vm9, %v311_v44 }
 0x4d8   :  { %657 = vmatpush.msrb.mxu2 %v146_v3  ;;  %v778_v3 = vld [vmem:[%s1360_s12 + $0x40] sm:$0xff] }
 0x4df   :  { %871 = vmatmul.msk.f32.vlgmr.msra.gmra.mxu2 %vm189_vm9, %v468_v46  ;;  %v927_v46 = vld [vmem:[%s1357_s9] ss:$0 sm:$0xff] }
 0x529   :  { %v593_v48 = vpop.xlane.xlu2 %592 }
 0x52a   :  { %962 = vrcp.f32 %v593_v48 }
 0x530   :  { %v963_v51 = vpop.eup %962 }
 0x531   :  { %v913_v47 = vpop.permute.xlu2 %912  ;;  %v596_v53 = vpop.xlane.xlu0 %595  ;;  %v599_v57 = vmul.f32 %v963_v51, %v951_v23 }
 0x532   :  { %v914_v52 = vunpack.i.l.bf16 %v913_v47  ;;  %v915_v56 = vunpack.i.h.bf16 %v913_v47  ;;  %964 = vrcp.f32 %v596_v53 }
 0x534   :  { %627 = vmatpush.msrb.mxu3 %v914_v52 }
 0x536   :  { %628 = vmatpush.msrb.mxu3 %v915_v56 }
 0x537   :  { %879 = vmatmul.msk.f32.vlgmr.msrb.gmra.mxu3 %vm189_vm9, %v599_v57 }
 0x538   :  { %v965_v58 = vpop.eup %964 }
 0x539   :  { %v465_v59 = vpop.xlane.xlu0 %464  ;;  %v600_v60 = vmul.f32 %v965_v58, %v953_v28  ;;  %v717_v28 = vld [vmem:[%s1358_s10 + $0x10] sm:$0xff] }
 0x53a   :  { %966 = vrcp.f32 %v465_v59 }
 0x53f   :  { %880 = vmatmul.msk.f32.gmra.mxu3 %vm189_vm9, %v600_v60  ;;  %v782_v60 = vld [vmem:[%s1360_s12 + $0x60] sm:$0xff] }
 0x540   :  { %v967_v62 = vpop.eup %966  ;;  %793 = vmatpush.msra.mxu1 %v782_v60 }
 0x541   :  { %v469_v63 = vmul.f32 %v967_v62, %v955_v31  ;;  %v781_v62 = vld [vmem:[%s1360_s12 + $0x58] sm:$0xff] }
 0x542   :  { %794 = vmatpush.msra.mxu1 %v781_v62 }
 0x543   :  { %872 = vmatmul.msk.f32.gmra.mxu2 %vm189_vm9, %v469_v63  ;;  %v780_v63 = vld [vmem:[%s1360_s12 + $0x50] sm:$0xff] }
 0x544   :  { %795 = vmatpush.msra.mxu1 %v780_v63 }
 0x546   :  { %796 = vmatpush.msra.mxu1 %v779_v2 }
 0x548   :  { %797 = vmatpush.msra.mxu1 %v778_v3 }
 0x552   :  { %v341_v4 = vpop.f32.mrf.mxu2 }
 0x553   :  { %863 = vmatmul.msk.f32.vlgmr.msrb.gmra.mxu0 %vm153_vm8, %v341_v4  ;;  %v777_v4 = vld [vmem:[%s1360_s12 + $0x38] sm:$0xff] }
 0x554   :  { %798 = vmatpush.msra.mxu1 %v777_v4 }
 0x55a   :  { %v344_v5 = vpop.f32.mrf.mxu2 }
 0x55b   :  { %864 = vmatmul.msk.f32.gmra.mxu0 %vm153_vm8, %v344_v5  ;;  %v776_v5 = vld [vmem:[%s1360_s12 + $0x30] sm:$0xff] }
 0x55c   :  { %799 = vmatpush.msra.mxu1 %v776_v5 }
 0x562   :  { %v499_v6 = vpop.f32.mrf.mxu2 }
 0x563   :  { %873 = vmatmul.msk.f32.vlgmr.msra.gmra.mxu0 %vm153_vm8, %v499_v6  ;;  %v775_v6 = vld [vmem:[%s1360_s12 + $0x28] sm:$0xff] }
 0x564   :  { %800 = vmatpush.msra.mxu1 %v775_v6 }
 0x5ba   :  { %v630_v7 = vpop.f32.mrf.mxu3 }
 0x5bb   :  { %881 = vmatmul.msk.f32.vlgmr.msrb.gmra.mxu2 %vm153_vm8, %v630_v7  ;;  %v774_v7 = vld [vmem:[%s1360_s12 + $0x20] sm:$0xff] }
 0x5bc   :  { %801 = vmatpush.msra.mxu1 %v774_v7 }
 0x5c2   :  { %v633_v8 = vpop.f32.mrf.mxu3 }
 0x5c3   :  { %882 = vmatmul.msk.f32.gmra.mxu2 %vm153_vm8, %v633_v8  ;;  %v773_v8 = vld [vmem:[%s1360_s12 + $0x18] sm:$0xff] }
 0x5c4   :  { %802 = vmatpush.msra.mxu1 %v773_v8 }
 0x5c6   :  { %v502_v9 = vpop.f32.mrf.mxu2 }
 0x5c7   :  { %874 = vmatmul.msk.f32.gmra.mxu0 %vm153_vm8, %v502_v9  ;;  %v772_v9 = vld [vmem:[%s1360_s12 + $0x10] sm:$0xff] }
 0x5c8   :  { %803 = vmatpush.msra.mxu1 %v772_v9 }
 0x5d0   :  { %v370_v55 = vpop.f32.mrf.mxu0 }
 0x5d1   :  { %v400_v12 = vadd.f32 %v1203_v49, %v370_v55  ;;  %v771_v55 = vld [vmem:[%s1360_s12 + $0x8] sm:$0xff] }
 0x5d2   :  { %804 = vmatpush.msra.mxu1 %v771_v55 }
 0x5d8   :  { %v373_v10 = vpop.f32.mrf.mxu0 }
 0x5d9   :  { %v403_v19 = vadd.f32 %v1205_v50, %v373_v10  ;;  %v718_v50 = vld [vmem:[%s1358_s10 + $0x18] sm:$0xff]  ;;  %v770_v10 = vld [vmem:[%s1360_s12] sm:$0xff]  ;;  %s1015_s12 = smov [#allocation2]  }
 0x5da   :  { %741 = vmatpush.msrb.mxu0 %v718_v50  ;;  %805 = vmatpush.msra.mxu1 %v770_v10  ;;  %s835_s27 = sshll.u32 %s1015_s12, 4  ;;  %s836_s27 = int_to_ptr.vmem [resolvable:$true] %s835_s27 }
 0x5dc   :  { %742 = vmatpush.msrb.mxu0 %v717_v28 }
 0x5e0   :  { %v528_v11 = vpop.f32.mrf.mxu0 }
 0x5e1   :  { %v534_v13 = vadd.f32 %v528_v11, %v400_v12  ;;  %v928_v11 = vld [vmem:[%s1359_s11] ss:$0 sm:$0xff] }
 0x63e   :  { %v659_v15 = vpop.f32.mrf.mxu2 }
 0x63f   :  { %v665_v17 = vadd.f32 %v659_v15, %v534_v13  ;;  %v814_v15 = vld [vmem:[%s1350_s2 + $0x8] sm:$0xff] }
 0x641   :  { %v671_v61 = vadd.f32 %v926_v14, %v665_v17  ;;  %v813_v17 = vld [vmem:[%s1350_s2] sm:$0xff] }
 0x643   :  { %v1248_v18 = vadd.f32 %v671_v61, %v1096_v0  ;;  %v1014_v61 = vmov 0  }
 0x644   :  { %v531_v20 = vpop.f32.mrf.mxu0  ;;  %922 = vset.pattern.permute.xlu0 %v1014_v61  ;;  %921 = vset.pattern.permute.xlu2 %v1014_v61 }
 0x645   :  { %v676_v21 = vmul.f32 %v1248_v18, %v1248_v18  ;;  %v535_v22 = vadd.f32 %v531_v20, %v403_v19  ;;  %817 = vperm.xlu2 %921, %v813_v17  }
 0x646   :  { %v662_v23 = vpop.f32.mrf.mxu2 }
 0x647   :  { %v678_v49 = vsel %vm53_vm0, %v676_v21, 0.0  ;;  %v666_v24 = vadd.f32 %v662_v23, %v535_v22 }
 0x648   :  { %679 = vadd.xlane.f32.xlu1 %v678_v49 }
 0x649   :  { %v672_v25 = vadd.f32 %v926_v14, %v666_v24 }
 0x64b   :  { %v1255_v26 = vadd.f32 %v672_v25, %v1101_v1  ;;  %v716_v1 = vld [vmem:[%s1358_s10 + $0x8] sm:$0xff] }
 0x64c   :  { %743 = vmatpush.msrb.mxu0 %v716_v1 }
 0x64d   :  { %v677_v0 = vmul.f32 %v1255_v26, %v1255_v26 }
 0x64e   :  { %744 = vmatpush.msrb.mxu0 %v715_v29 }
 0x64f   :  { %v681_v27 = vsel %vm53_vm0, %v677_v0, 0.0 }
 0x650   :  { %682 = vadd.xlane.f32.xlu0 %v681_v27 }
 0x664   :  { %822 = vperm.xlu0 %922, %v814_v15  }
 0x6bb   :  { %v680_v30 = vpop.xlane.xlu1 %679 }
 0x6bc   :  { %v684_v31 = vmul.f32 %v680_v30, %v1121_v16 }
 0x6be   :  { %v686_v32 = vadd.f32 1e-06, %v684_v31 }
 0x6c0   :  { %968 = vrsqrt.f32 %v686_v32  ;;  %vm694_vm11 = vweird.f32 %v686_v32 }
 0x6c3   :  { %v683_v36 = vpop.xlane.xlu0 %682 }
 0x6c4   :  { %v685_v37 = vmul.f32 %v683_v36, %v1121_v16 }
 0x6c6   :  { %v969_v38 = vpop.eup %968  ;;  %v687_v40 = vadd.f32 1e-06, %v685_v37  ;;  %v818_v37 = vpop.permute.xlu2 %817 }
 0x6c7   :  { %v689_v39 = vmul.f32 %v969_v38, %v686_v32  ;;  %vm695_vm10 = vweird.f32 %v969_v38 }
 0x6c8   :  { %970 = vrsqrt.f32 %v687_v40  ;;  %vm696_vm12 = vmor %vm694_vm11, %vm695_vm10  ;;  %vm704_vm14 = vweird.f32 %v687_v40 }
 0x6c9   :  { %v690_v41 = vmul.f32 %v969_v38, %v689_v39 }
 0x6cb   :  { %v691_v42 = vmul.f32 0.5, %v690_v41 }
 0x6cd   :  { %v692_v43 = vsub.f32 1.5, %v691_v42 }
 0x6ce   :  { %v971_v44 = vpop.eup %970 }
 0x6cf   :  { %v693_v45 = vmul.f32 %v969_v38, %v692_v43  ;;  %v699_v48 = vmul.f32 %v971_v44, %v687_v40  ;;  %vm705_vm13 = vweird.f32 %v971_v44 }
 0x6d0   :  { %vm706_vm15 = vmor %vm704_vm14, %vm705_vm13 }
 0x6d1   :  { %v697_v47 = vsel %vm696_vm12, %v969_v38, %v693_v45  ;;  %v700_v51 = vmul.f32 %v971_v44, %v699_v48 }
 0x6d2   :  { %v708_v16 = vmul.f32 %v697_v47, %v1248_v18 }
 0x6d3   :  { %v701_v53 = vmul.f32 0.5, %v700_v51 }
 0x6d4   :  { %v713_v52 = vmul.f32 %v927_v46, %v708_v16 }
 0x6d5   :  { %v702_v54 = vsub.f32 1.5, %v701_v53 }
 0x6d6   :  { %883 = vmatmul.msk.f32.vlgmr.msrb.gmra.mxu0 %vm53_vm0, %v713_v52  ;;  %v823_v42 = vpop.permute.xlu0 %822 }
 0x6d7   :  { %v703_v56 = vmul.f32 %v971_v44, %v702_v54 }
 0x6d9   :  { %v707_v57 = vsel %vm706_vm15, %v971_v44, %v703_v56 }
 0x6da   :  { %v709_v58 = vmul.f32 %v707_v57, %v1255_v26 }
 0x6dc   :  { %v714_v59 = vmul.f32 %v927_v46, %v709_v58 }
 0x6de   :  { %884 = vmatmul.msk.f32.gmra.mxu0 %vm53_vm0, %v714_v59 }
 0x753   :  { %v746_v12 = vpop.f32.mrf.mxu0 }
 0x754   :  { %v747_v13 = vadd.f32 %v928_v11, %v746_v12 }
 0x756   :  { %v752_v14 = vmul.f32 %v747_v13, %v747_v13 }
 0x758   :  { %v754_v19 = vmul.f32 %v752_v14, %v747_v13 }
 0x75a   :  { %v756_v20 = vmul.f32 0.044715, %v754_v19 }
 0x75b   :  { %v749_v22 = vpop.f32.mrf.mxu0 }
 0x75c   :  { %v758_v21 = vadd.f32 %v756_v20, %v747_v13  ;;  %v750_v23 = vadd.f32 %v928_v11, %v749_v22 }
 0x75e   :  { %v760_v49 = vmul.f32 0.7978846, %v758_v21  ;;  %v753_v24 = vmul.f32 %v750_v23, %v750_v23 }
 0x760   :  { %972 = vtanh.f32 %v760_v49  ;;  %v755_v25 = vmul.f32 %v753_v24, %v750_v23 }
 0x762   :  { %v757_v0 = vmul.f32 0.044715, %v755_v25 }
 0x764   :  { %v759_v27 = vadd.f32 %v757_v0, %v750_v23 }
 0x766   :  { %v973_v50 = vpop.eup %972  ;;  %v761_v1 = vmul.f32 0.7978846, %v759_v27 }
 0x767   :  { %v764_v28 = vadd.f32 1.0, %v973_v50 }
 0x768   :  { %974 = vtanh.f32 %v761_v1 }
 0x769   :  { %v766_v29 = vmul.f32 0.5, %v764_v28 }
 0x76b   :  { %v768_v30 = vmul.f32 %v766_v29, %v747_v13 }
 0x76d   :  { %806 = vmatmul.f32.vlgmr.msra.gmra.mxu1 %v768_v30 }
 0x76e   :  { %v975_v31 = vpop.eup %974 }
 0x76f   :  { %v765_v32 = vadd.f32 1.0, %v975_v31 }
 0x771   :  { %v767_v33 = vmul.f32 0.5, %v765_v32 }
 0x773   :  { %v769_v34 = vmul.f32 %v767_v33, %v750_v23 }
 0x775   :  { %809 = vmatmul.f32.gmra.mxu1 %v769_v34 }
 0x7ea   :  { %v807_v36 = vpop.f32.mrf.mxu1 }
 0x7eb   :  { %v808_v38 = vadd.f32 %v929_v35, %v807_v36 }
 0x7ed   :  { %v825_v39 = vmul.f32 %v818_v37, %v808_v38 }
 0x7ef   :  { %v827_v40 = vadd.f32 %v825_v39, %v1248_v18 }
 0x7f1   :  { %829 = vst.msk [vmem:[#allocation2] sm:$0xff] %vm53_vm0, %v827_v40 }
 0x7f2   :  { %v810_v41 = vpop.f32.mrf.mxu1 }
 0x7f3   :  { %v811_v43 = vadd.f32 %v929_v35, %v810_v41 }
 0x7f5   :  { %v826_v44 = vmul.f32 %v823_v42, %v811_v43 }
 0x7f7   :  { %v828_v45 = vadd.f32 %v826_v44, %v1255_v26 }
 0x7f9   :  { %830 = vst.msk [vmem:[#allocation2 + $0x8] sm:$0xff] %vm53_vm0, %v828_v45 }
 0x7fa   :  { %843 = dma.vmem_to_hbm [thread:$0]  %s836_s27, 256, %s838_s29, [#allocation3], %s1016_s13, %s1016_s13, %s1017_s8  }
 0x7fb   :  { %1000 = dma.done.wait [#allocation3], 256  }
 0x7fc   :  { %1001 = vsyncadd [#allocation3], 4294967040 }
 0x7fd   :  { %848 = vsyncpa [#allocation3], 1 }

</bundles_post_ra>
